<compile_context>
chip_gen: v6e
topology: v6e:2x2x1
jax: 0.10.0
libtpu: 0.0.40
codegen_flags: <defaults>
</compile_context>

<pallas_src>
import jax
import jax.numpy as jnp
from jax.experimental import pallas as pl
from jax.experimental.pallas import tpu as pltpu

# Hyperparameters from TextCNN.__init__ / forward
EMB = 100        # self.embding_sizes
BATCH = 3        # self.batch_sizes
SEQ = 3          # implied by Linear(3, 2): C_OUT * ((SEQ-1)//2) == 3
C_OUT = 3        # conv output channels
KH = 2           # conv kernel height
N_CLASSES = 2
N_PAD = 128      # lane-dense output width (real logits in columns [:2])
ALIGN = 16       # bf16 sublane tile height


def _round_up(a, m):
    return pl.cdiv(a, m) * m


def textcnn_kernel(x_ref, wk0_ref, wk1_ref, bc_ref, wfc_ref, bfc_ref, out_ref):
    S, TB, E = x_ref.shape            # x_ref: (S, TB, E) bf16
    T = S - 1                         # conv output time steps
    H = T // 2                        # pooled time length (floor mode)

    # --- Conv2d(1, C, (KH, E)) + bias + ReLU, window sum formed in-kernel ---
    # conv[t] = x[t] @ wk0 + x[t+1] @ wk1   (two K=E bf16 MXU dots per step)
    conv = []
    for t in range(T):
        c = (jnp.dot(x_ref[t], wk0_ref[...], preferred_element_type=jnp.float32)
             + jnp.dot(x_ref[t + 1], wk1_ref[...], preferred_element_type=jnp.float32)
             + bc_ref[...])
        conv.append(jnp.maximum(c, 0.0))                      # (TB, C) f32

    # --- MaxPool2d((2, 1)) over time + NCHW flatten + Linear ----------------
    # FC weight arrives pre-permuted as (H, C, N_PAD), so the channel-major
    # flatten is just a sum of per-offset dots (no in-kernel transpose).
    fc_terms = []
    for h in range(H):
        pooled_h = jnp.maximum(conv[2 * h], conv[2 * h + 1])  # (TB, C) f32
        fc_terms.append(jnp.dot(pooled_h.astype(wfc_ref.dtype), wfc_ref[h],
                                preferred_element_type=jnp.float32))
    out = fc_terms[0]
    for term in fc_terms[1:]:
        out = out + term
    out_ref[...] = out + bfc_ref[...]                         # (TB, N_PAD) f32


def textcnn_forward(x, w_conv, b_conv, w_fc, b_fc, *, block_b=1024):
    """x: (B, S, E); w_conv: (C, 1, KH, E); b_conv: (C,);
    w_fc: (2, C*H); b_fc: (2,)  -- PyTorch parameter layouts."""
    B, S, E = x.shape
    C = w_conv.shape[0]
    T = S - 1
    H = T // 2

    # Batch tile: bf16-sublane aligned, capped at block_b, and sized so that
    # large batches produce >= 2 grid blocks (v7x has 2 TensorCores).
    B_al = _round_up(B, ALIGN)
    TB = min(block_b, max(ALIGN, _round_up(pl.cdiv(B_al, 2), ALIGN)))
    B_pad = _round_up(B, TB)
    n_blocks = B_pad // TB

    # Layout plumbing only (no im2col, no K padding): (S, B_pad, E) bf16.
    xt = jnp.transpose(x.astype(jnp.bfloat16), (1, 0, 2))      # (S, B, E)
    xt = jnp.pad(xt, ((0, 0), (0, B_pad - B), (0, 0)))          # (S, B_pad, E)

    # Conv weight split into its two kernel rows: (E, C) each, bf16.
    wk0 = jnp.transpose(w_conv[:, 0, 0, :]).astype(jnp.bfloat16)  # (E, C)
    wk1 = jnp.transpose(w_conv[:, 0, 1, :]).astype(jnp.bfloat16)  # (E, C)
    bc = b_conv.reshape(1, C).astype(jnp.float32)

    # FC weight pre-permuted per pooled-time-offset h and lane-padded to 128:
    # wfc[h, c, n] = w_fc[n, c*H + h]   (NCHW flatten folded into the weight)
    wfc = jnp.transpose(w_fc).reshape(C, H, N_CLASSES)
    wfc = jnp.transpose(wfc, (1, 0, 2))                          # (H, C, 2)
    wfc = jnp.pad(wfc, ((0, 0), (0, 0), (0, N_PAD - N_CLASSES)))
    wfc = wfc.astype(jnp.bfloat16)                               # (H, C, 128)
    bfc = jnp.pad(b_fc.reshape(1, N_CLASSES).astype(jnp.float32),
                  ((0, 0), (0, N_PAD - N_CLASSES)))              # (1, 128)

    flops = 2 * B * T * KH * E * C + 2 * B * C * H * N_CLASSES
    bytes_accessed = (xt.size * 2 + wk0.size * 2 + wk1.size * 2 + wfc.size * 2
                      + bc.size * 4 + bfc.size * 4 + B_pad * N_PAD * 4)

    out = pl.pallas_call(
        textcnn_kernel,
        out_shape=jax.ShapeDtypeStruct((B_pad, N_PAD), jnp.float32),
        grid=(n_blocks,),
        in_specs=[
            pl.BlockSpec((S, TB, E), lambda i: (0, i, 0)),       # activations
            pl.BlockSpec((E, C), lambda i: (0, 0)),              # conv W row 0
            pl.BlockSpec((E, C), lambda i: (0, 0)),              # conv W row 1
            pl.BlockSpec((1, C), lambda i: (0, 0)),              # conv bias
            pl.BlockSpec((H, C, N_PAD), lambda i: (0, 0, 0)),    # fc W (per h)
            pl.BlockSpec((1, N_PAD), lambda i: (0, 0)),          # fc bias
        ],
        out_specs=pl.BlockSpec((TB, N_PAD), lambda i: (i, 0)),   # lane-dense
        compiler_params=pltpu.CompilerParams(
            dimension_semantics=("parallel",)),                  # v7x: 2 TCs
        cost_estimate=pl.CostEstimate(
            flops=flops, transcendentals=0, bytes_accessed=bytes_accessed),
    )(xt, wk0, wk1, bc, wfc, bfc)
    return out[:B, :N_CLASSES]


def textcnn_reference(x, w_conv, b_conv, w_fc, b_fc):
    """Pure-JAX f32 reference matching PyTorch semantics exactly."""
    B, S, E = x.shape
    C = w_conv.shape[0]
    wk = w_conv[:, 0].reshape(C, KH * E)                         # (C, 2E)
    outs = []
    for t in range(S - 1):
        win = jnp.concatenate([x[:, t, :], x[:, t + 1, :]], axis=-1)  # (B, 2E)
        outs.append(win @ wk.T + b_conv)
    conv = jnp.maximum(jnp.stack(outs, axis=1), 0.0)             # (B, S-1, C)
    H = (S - 1) // 2
    pooled = jnp.max(conv[:, :2 * H].reshape(B, H, 2, C), axis=2)      # (B,H,C)
    flat = jnp.transpose(pooled, (0, 2, 1)).reshape(B, C * H)          # NCHW
    return flat @ w_fc.T + b_fc


if __name__ == "__main__":
    key = jax.random.PRNGKey(0)
    kx, kw1, kb1, kw2, kb2 = jax.random.split(key, 5)

    H = (SEQ - 1) // 2                                           # = 1
    x = jax.random.normal(kx, (BATCH, SEQ, EMB), dtype=jnp.float32)
    w_conv = 0.1 * jax.random.normal(kw1, (C_OUT, 1, KH, EMB), dtype=jnp.float32)
    b_conv = 0.1 * jax.random.normal(kb1, (C_OUT,), dtype=jnp.float32)
    w_fc = 0.1 * jax.random.normal(kw2, (N_CLASSES, C_OUT * H), dtype=jnp.float32)
    b_fc = 0.1 * jax.random.normal(kb2, (N_CLASSES,), dtype=jnp.float32)

    # Exact module shape: B = 3 (self.batch_sizes), S = 3.
    out = jax.block_until_ready(textcnn_forward(x, w_conv, b_conv, w_fc, b_fc))
    ref = textcnn_reference(x, w_conv, b_conv, w_fc, b_fc)
    assert out.shape == (BATCH, N_CLASSES)
    # bf16 activations/weights (f32 accumulate) -> looser tolerance than f32.
    assert jnp.allclose(out, ref, atol=3e-2, rtol=3e-2), (out, ref)

    # Batched path: same weights, larger batch -> 2 grid blocks of 128 rows,
    # exercising the "parallel" axis (both TCs on v7x).
    xb = jax.random.normal(kx, (256, SEQ, EMB), dtype=jnp.float32)
    out_b = jax.block_until_ready(textcnn_forward(xb, w_conv, b_conv, w_fc, b_fc))
    ref_b = textcnn_reference(xb, w_conv, b_conv, w_fc, b_fc)
    assert out_b.shape == (256, N_CLASSES)
    assert jnp.allclose(out_b, ref_b, atol=3e-2, rtol=3e-2)

    print("KERNEL_OK")
</pallas_src>

<mosaic_0001>
module attributes {stable_mosaic.version = 11 : i64} {
  func.func @textcnn_kernel(%arg0: i32, %arg1: memref<3x16x100xbf16, #tpu.memory_space<vmem>>, %arg2: memref<100x3xbf16, #tpu.memory_space<vmem>>, %arg3: memref<100x3xbf16, #tpu.memory_space<vmem>>, %arg4: memref<1x3xf32, #tpu.memory_space<vmem>>, %arg5: memref<1x3x128xbf16, #tpu.memory_space<vmem>>, %arg6: memref<1x128xf32, #tpu.memory_space<vmem>>, %arg7: memref<16x128xf32, #tpu.memory_space<vmem>>) attributes {dimension_semantics = [#tpu.dimension_semantics<parallel>], iteration_bounds = array<i64: 1>, scalar_prefetch = 0 : i64, scratch_operands = 0 : i64, tpu.core_type = #tpu.core_type<tc>, window_params = [{transform_indices = @transform_0, window_bounds = array<i64: 3, 16, 100>}, {pipeline_mode = #tpu.pipeline_mode<synchronous>, transform_indices = @transform_1, window_bounds = array<i64: 100, 3>}, {pipeline_mode = #tpu.pipeline_mode<synchronous>, transform_indices = @transform_2, window_bounds = array<i64: 100, 3>}, {pipeline_mode = #tpu.pipeline_mode<synchronous>, transform_indices = @transform_3, window_bounds = array<i64: 1, 3>}, {pipeline_mode = #tpu.pipeline_mode<synchronous>, transform_indices = @transform_4, window_bounds = array<i64: 1, 3, 128>}, {pipeline_mode = #tpu.pipeline_mode<synchronous>, transform_indices = @transform_5, window_bounds = array<i64: 1, 128>}, {transform_indices = @transform_6, window_bounds = array<i64: 16, 128>}]} {
    %c0 = arith.constant 0 : index
    %c0_0 = arith.constant 0 : index
    %c0_1 = arith.constant 0 : index
    %0 = vector.load %arg1[%c0, %c0_0, %c0_1] : memref<3x16x100xbf16, #tpu.memory_space<vmem>>, vector<1x16x100xbf16>
    %1 = vector.shape_cast %0 : vector<1x16x100xbf16> to vector<16x100xbf16>
    %c0_2 = arith.constant 0 : index
    %c0_3 = arith.constant 0 : index
    %2 = vector.load %arg2[%c0_2, %c0_3] : memref<100x3xbf16, #tpu.memory_space<vmem>>, vector<100x3xbf16>
    %cst = arith.constant dense<0.000000e+00> : vector<16x3xf32>
    %3 = tpu.matmul %1, %2, %cst {dimension_numbers = #tpu.dot_dimension_numbers<[1], [0], [0], [1], [0, 0, 1, 1], [], []>} : vector<16x100xbf16>, vector<100x3xbf16>, vector<16x3xf32> -> vector<16x3xf32>
    %c1 = arith.constant 1 : index
    %c0_4 = arith.constant 0 : index
    %c0_5 = arith.constant 0 : index
    %4 = vector.load %arg1[%c1, %c0_4, %c0_5] : memref<3x16x100xbf16, #tpu.memory_space<vmem>>, vector<1x16x100xbf16>
    %5 = vector.shape_cast %4 : vector<1x16x100xbf16> to vector<16x100xbf16>
    %c0_6 = arith.constant 0 : index
    %c0_7 = arith.constant 0 : index
    %6 = vector.load %arg3[%c0_6, %c0_7] : memref<100x3xbf16, #tpu.memory_space<vmem>>, vector<100x3xbf16>
    %cst_8 = arith.constant dense<0.000000e+00> : vector<16x3xf32>
    %7 = tpu.matmul %5, %6, %cst_8 {dimension_numbers = #tpu.dot_dimension_numbers<[1], [0], [0], [1], [0, 0, 1, 1], [], []>} : vector<16x100xbf16>, vector<100x3xbf16>, vector<16x3xf32> -> vector<16x3xf32>
    %8 = arith.addf %3, %7 : vector<16x3xf32>
    %c0_9 = arith.constant 0 : index
    %c0_10 = arith.constant 0 : index
    %9 = vector.load %arg4[%c0_9, %c0_10] : memref<1x3xf32, #tpu.memory_space<vmem>>, vector<1x3xf32>
    %10 = vector.broadcast %9 : vector<1x3xf32> to vector<16x3xf32>
    %11 = arith.addf %8, %10 : vector<16x3xf32>
    %cst_11 = arith.constant 0.000000e+00 : f32
    %12 = vector.broadcast %cst_11 : f32 to vector<16x3xf32>
    %13 = arith.maximumf %11, %12 : vector<16x3xf32>
    %c1_12 = arith.constant 1 : index
    %c0_13 = arith.constant 0 : index
    %c0_14 = arith.constant 0 : index
    %14 = vector.load %arg1[%c1_12, %c0_13, %c0_14] : memref<3x16x100xbf16, #tpu.memory_space<vmem>>, vector<1x16x100xbf16>
    %15 = vector.shape_cast %14 : vector<1x16x100xbf16> to vector<16x100xbf16>
    %c0_15 = arith.constant 0 : index
    %c0_16 = arith.constant 0 : index
    %16 = vector.load %arg2[%c0_15, %c0_16] : memref<100x3xbf16, #tpu.memory_space<vmem>>, vector<100x3xbf16>
    %cst_17 = arith.constant dense<0.000000e+00> : vector<16x3xf32>
    %17 = tpu.matmul %15, %16, %cst_17 {dimension_numbers = #tpu.dot_dimension_numbers<[1], [0], [0], [1], [0, 0, 1, 1], [], []>} : vector<16x100xbf16>, vector<100x3xbf16>, vector<16x3xf32> -> vector<16x3xf32>
    %c2 = arith.constant 2 : index
    %c0_18 = arith.constant 0 : index
    %c0_19 = arith.constant 0 : index
    %18 = vector.load %arg1[%c2, %c0_18, %c0_19] : memref<3x16x100xbf16, #tpu.memory_space<vmem>>, vector<1x16x100xbf16>
    %19 = vector.shape_cast %18 : vector<1x16x100xbf16> to vector<16x100xbf16>
    %c0_20 = arith.constant 0 : index
    %c0_21 = arith.constant 0 : index
    %20 = vector.load %arg3[%c0_20, %c0_21] : memref<100x3xbf16, #tpu.memory_space<vmem>>, vector<100x3xbf16>
    %cst_22 = arith.constant dense<0.000000e+00> : vector<16x3xf32>
    %21 = tpu.matmul %19, %20, %cst_22 {dimension_numbers = #tpu.dot_dimension_numbers<[1], [0], [0], [1], [0, 0, 1, 1], [], []>} : vector<16x100xbf16>, vector<100x3xbf16>, vector<16x3xf32> -> vector<16x3xf32>
    %22 = arith.addf %17, %21 : vector<16x3xf32>
    %c0_23 = arith.constant 0 : index
    %c0_24 = arith.constant 0 : index
    %23 = vector.load %arg4[%c0_23, %c0_24] : memref<1x3xf32, #tpu.memory_space<vmem>>, vector<1x3xf32>
    %24 = vector.broadcast %23 : vector<1x3xf32> to vector<16x3xf32>
    %25 = arith.addf %22, %24 : vector<16x3xf32>
    %cst_25 = arith.constant 0.000000e+00 : f32
    %26 = vector.broadcast %cst_25 : f32 to vector<16x3xf32>
    %27 = arith.maximumf %25, %26 : vector<16x3xf32>
    %28 = arith.maximumf %13, %27 : vector<16x3xf32>
    %29 = arith.truncf %28 : vector<16x3xf32> to vector<16x3xbf16>
    %c0_26 = arith.constant 0 : index
    %c0_27 = arith.constant 0 : index
    %c0_28 = arith.constant 0 : index
    %30 = vector.load %arg5[%c0_26, %c0_27, %c0_28] : memref<1x3x128xbf16, #tpu.memory_space<vmem>>, vector<1x3x128xbf16>
    %31 = vector.shape_cast %30 : vector<1x3x128xbf16> to vector<3x128xbf16>
    %cst_29 = arith.constant dense<0.000000e+00> : vector<16x128xf32>
    %32 = tpu.matmul %29, %31, %cst_29 {dimension_numbers = #tpu.dot_dimension_numbers<[1], [0], [0], [1], [0, 0, 1, 1], [], []>} : vector<16x3xbf16>, vector<3x128xbf16>, vector<16x128xf32> -> vector<16x128xf32>
    %c0_30 = arith.constant 0 : index
    %c0_31 = arith.constant 0 : index
    %33 = vector.load %arg6[%c0_30, %c0_31] : memref<1x128xf32, #tpu.memory_space<vmem>>, vector<1x128xf32>
    %34 = vector.broadcast %33 : vector<1x128xf32> to vector<16x128xf32>
    %35 = arith.addf %32, %34 : vector<16x128xf32>
    %c0_32 = arith.constant 0 : index
    %c0_33 = arith.constant 0 : index
    %36 = vector.load %arg7[%c0_32, %c0_33] : memref<16x128xf32, #tpu.memory_space<vmem>>, vector<16x128xf32>
    tpu.vector_store %arg7[%c0_32, %c0_33], %35 {strides = array<i32>} : memref<16x128xf32, #tpu.memory_space<vmem>>, vector<16x128xf32>,
    return
  }
  func.func @transform_0(%arg0: i32) -> (i32, i32, i32) {
    %c0_i32 = arith.constant 0 : i32
    %c0_i32_0 = arith.constant 0 : i32
    %c0_i32_1 = arith.constant 0 : i32
    return %c0_i32, %arg0, %c0_i32_0 : i32, i32, i32
  }
  func.func @transform_1(%arg0: i32) -> (i32, i32) {
    %c0_i32 = arith.constant 0 : i32
    %c0_i32_0 = arith.constant 0 : i32
    %c0_i32_1 = arith.constant 0 : i32
    return %c0_i32, %c0_i32_0 : i32, i32
  }
  func.func @transform_2(%arg0: i32) -> (i32, i32) {
    %c0_i32 = arith.constant 0 : i32
    %c0_i32_0 = arith.constant 0 : i32
    %c0_i32_1 = arith.constant 0 : i32
    return %c0_i32, %c0_i32_0 : i32, i32
  }
  func.func @transform_3(%arg0: i32) -> (i32, i32) {
    %c0_i32 = arith.constant 0 : i32
    %c0_i32_0 = arith.constant 0 : i32
    %c0_i32_1 = arith.constant 0 : i32
    return %c0_i32, %c0_i32_0 : i32, i32
  }
  func.func @transform_4(%arg0: i32) -> (i32, i32, i32) {
    %c0_i32 = arith.constant 0 : i32
    %c0_i32_0 = arith.constant 0 : i32
    %c0_i32_1 = arith.constant 0 : i32
    %c0_i32_2 = arith.constant 0 : i32
    return %c0_i32, %c0_i32_0, %c0_i32_1 : i32, i32, i32
  }
  func.func @transform_5(%arg0: i32) -> (i32, i32) {
    %c0_i32 = arith.constant 0 : i32
    %c0_i32_0 = arith.constant 0 : i32
    %c0_i32_1 = arith.constant 0 : i32
    return %c0_i32, %c0_i32_0 : i32, i32
  }
  func.func @transform_6(%arg0: i32) -> (i32, i32) {
    %c0_i32 = arith.constant 0 : i32
    %c0_i32_0 = arith.constant 0 : i32
    return %arg0, %c0_i32 : i32, i32
  }
}

</mosaic_0001>

<bundles_post_ra>
// kernel: tpu_custom_call.1
= control target key start
LH: loop header
LB: loop body
LE: loop exit
PB: predicated region body
PF: predicated region fallthrough
CT: control target
= control target key end

     0   :  { %v613_v1 = vmov 0.0   ;;  %vm104_vm0 = vcmask 1041408   ;;  %vm614_vm1 = vmmov 0   ;;  %s763_s0 = inlined_call_operand.vmem [shape: bf16[3,16,100], index: 0, kind: input, shape index: {}]   ;;  %s764_s1 = inlined_call_operand.vmem [shape: bf16[100,3], index: 1, kind: input, shape index: {}]   ;;  %s765_s2 = inlined_call_operand.vmem [shape: bf16[100,3], index: 2, kind: input, shape index: {}]   ;;  %s766_s3 = inlined_call_operand.vmem [shape: f32[1,3], index: 3, kind: input, shape index: {}]   ;;  %s767_s4 = inlined_call_operand.vmem [shape: bf16[1,3,128], index: 4, kind: input, shape index: {}]   ;;  %s768_s5 = inlined_call_operand.vmem [shape: f32[1,128], index: 5, kind: input, shape index: {}]   ;;  %s769_s6 = inlined_call_operand.hbm [shape: f32[16,128], index: 6, kind: output, shape index: {}]  }
   0x1   :  { %v574_v0 = vld [vmem:[%s765_s2 + $0x30] ss:$0 sps:$4 sm:$0x33]   ;;  %490 = vmatprep.subr.bf16.mxu0 %v613_v1  ;;  %508 = vmatprep.subr.bf16.mxu1 %v613_v1  ;;  %v576_v4 = vld [vmem:[%s765_s2 + $0x28] sm:$0xff]   ;;  %v578_v7 = vld [vmem:[%s765_s2 + $0x20] sm:$0xff]  }
   0x2   :  { %v106_v2 = vsel %vm104_vm0, %v574_v0, 0  ;;  %v575_v3 = vld [vmem:[%s764_s1 + $0x30] ss:$0 sps:$4 sm:$0x33]   ;;  %504 = vmatprep.mubr.msk.bf16.mxu0 %vm614_vm1, %v613_v1  ;;  %522 = vmatprep.mubr.msk.bf16.mxu1 %vm614_vm1, %v613_v1  ;;  %v577_v6 = vld [vmem:[%s764_s1 + $0x28] sm:$0xff]   ;;  %v579_v8 = vld [vmem:[%s764_s1 + $0x20] sm:$0xff]  }
   0x3   :  { %491 = vmatpush3.bf16.msra.mxu0 %v106_v2  ;;  %v197_v5 = vsel %vm104_vm0, %v575_v3, 0  ;;  %v580_v9 = vld [vmem:[%s765_s2 + $0x18] sm:$0xff]   ;;  %v582_v11 = vld [vmem:[%s765_s2 + $0x10] sm:$0xff]  }
   0x4   :  { %492 = vmatprep.subr.bf16.mxu0 %v613_v1  ;;  %509 = vmatpush3.bf16.msra.mxu1 %v197_v5  ;;  %v581_v10 = vld [vmem:[%s764_s1 + $0x18] sm:$0xff]   ;;  %v583_v12 = vld [vmem:[%s764_s1 + $0x10] sm:$0xff]  }
   0x5   :  { %510 = vmatprep.subr.bf16.mxu1 %v613_v1 }
   0x7   :  { %493 = vmatpush3.bf16.msra.mxu0 %v576_v4 }
   0x8   :  { %494 = vmatprep.subr.bf16.mxu0 %v613_v1  ;;  %511 = vmatpush3.bf16.msra.mxu1 %v577_v6 }
   0x9   :  { %512 = vmatprep.subr.bf16.mxu1 %v613_v1 }
   0xb   :  { %495 = vmatpush3.bf16.msra.mxu0 %v578_v7 }
   0xc   :  { %496 = vmatprep.subr.bf16.mxu0 %v613_v1  ;;  %513 = vmatpush3.bf16.msra.mxu1 %v579_v8 }
   0xd   :  { %514 = vmatprep.subr.bf16.mxu1 %v613_v1 }
   0xf   :  { %497 = vmatpush3.bf16.msra.mxu0 %v580_v9 }
  0x10   :  { %498 = vmatprep.subr.bf16.mxu0 %v613_v1  ;;  %515 = vmatpush3.bf16.msra.mxu1 %v581_v10 }
  0x11   :  { %11 = vsyncpa [#allocation3], 0  ;;  %516 = vmatprep.subr.bf16.mxu1 %v613_v1  ;;  %v584_v13 = vld [vmem:[%s765_s2 + $0x8] sm:$0xff]   ;;  %v586_v15 = vld [vmem:[%s765_s2] sm:$0xff]   ;;  %vm100_vm2 = vcmask 818176   ;;  %vm363_vm3 = vcmask 1040384  }
  0x12   :  { %v585_v14 = vld [vmem:[%s764_s1 + $0x8] sm:$0xff]   ;;  %v587_v16 = vld [vmem:[%s764_s1] sm:$0xff]   ;;  %v615_v19 = vmov 65535   ;;  %v590_v23 = vld [vmem:[%s763_s0 + $0x10] sm:$0xff]   ;;  %vm359_vm4 = vcmask 23552   ;;  %s616_s8 = smov [#allocation2]  }
  0x13   :  { %499 = vmatpush3.bf16.msra.mxu0 %v582_v11  ;;  %v588_v17 = vld [vmem:[%s763_s0 + $0x8] sm:$0xff]   ;;  %v589_v18 = vld [vmem:[%s763_s0] sm:$0xff]   ;;  %v364_v20 = vsel %vm363_vm3, 4294967295, %v615_v19  ;;  %s417_s9 = sshll.u32 %s616_s8, 4  ;;  %s418_s9 = int_to_ptr.vmem [resolvable:$true] %s417_s9 }
  0x14   :  { %500 = vmatprep.subr.bf16.mxu0 %v613_v1  ;;  %517 = vmatpush3.bf16.msra.mxu1 %v583_v12  ;;  %v351_v21 = vld [vmem:[%s767_s4] sm:$0x3]  ;;  %v365_v22 = vsel %vm104_vm0, %v364_v20, 0  ;;  %s591_s10 = scalar_lea.vmem %s418_s9, 256  ;;  %p596_p1 = scmp.lt.s32.totalorder %s418_s9, %s418_s9 }
  0x15   :  { %518 = vmatprep.subr.bf16.mxu1 %v613_v1  ;;  %v367_v24 = vand.u32 %v365_v22, %v351_v21  ;;  %v448_v40 = vld [vmem:[%s766_s3] ss:$0 sm:$0xff]  ;;  %p592_p0 = scmp.ne.s32.totalorder %s418_s9, %s591_s10  ;;  %p597_p2 = scmp.lt.s32.totalorder %s591_s10, %s591_s10 }
  0x16   :  { %v454_v57 = vld [vmem:[%s768_s5] ss:$0 sm:$0xff] }
  0x17   :  { %501 = vmatpush3.bf16.msra.mxu0 %v584_v13  ;;  %p598_p3 = por %p597_p2, %p596_p1 }
  0x18   :  { %502 = vmatprep.subr.bf16.mxu0 %v613_v1  ;;  %519 = vmatpush3.bf16.msra.mxu1 %v585_v14 }
  0x19   :  { %520 = vmatprep.subr.bf16.mxu1 %v613_v1  ;;  %p599_p4 = pnand %p598_p3, %p592_p0 }
  0x1b   :  { %503 = vmatpush3.bf16.msra.mxu0 %v586_v15 }
  0x1c   :  { %526 = vmatprep.subr.bf16.mxu0 %v613_v1  ;;  %521 = vmatpush3.bf16.msra.mxu1 %v587_v16 }
  0x1d   :  { %544 = vmatprep.subr.bf16.mxu1 %v613_v1 }
  0x1e   :  { %505 = vmatmul.mubr.msk.bf16.vlgmr.msra.gmra.mxu0 %vm100_vm2, %v588_v17 }
  0x1f   :  { %527 = vmatpush3.bf16.msra.mxu0 %v106_v2  ;;  %540 = vmatprep.mubr.msk.bf16.mxu0 %vm614_vm1, %v613_v1 }
  0x20   :  { %528 = vmatprep.subr.bf16.mxu0 %v613_v1  ;;  %523 = vmatmul.mubr.msk.bf16.vlgmr.msra.gmra.mxu1 %vm100_vm2, %v589_v18 }
  0x21   :  { %545 = vmatpush3.bf16.msra.mxu1 %v197_v5  ;;  %558 = vmatprep.mubr.msk.bf16.mxu1 %vm614_vm1, %v613_v1 }
  0x22   :  { %546 = vmatprep.subr.bf16.mxu1 %v613_v1 }
  0x23   :  { %529 = vmatpush3.bf16.msra.mxu0 %v576_v4 }
  0x24   :  { %530 = vmatprep.subr.bf16.mxu0 %v613_v1 }
  0x25   :  { %547 = vmatpush3.bf16.msra.mxu1 %v577_v6 }
  0x26   :  { %548 = vmatprep.subr.bf16.mxu1 %v613_v1 }
  0x27   :  { %531 = vmatpush3.bf16.msra.mxu0 %v578_v7 }
  0x28   :  { %532 = vmatprep.subr.bf16.mxu0 %v613_v1 }
  0x29   :  { %549 = vmatpush3.bf16.msra.mxu1 %v579_v8 }
  0x2a   :  { %550 = vmatprep.subr.bf16.mxu1 %v613_v1 }
  0x2b   :  { %533 = vmatpush3.bf16.msra.mxu0 %v580_v9 }
  0x2c   :  { %534 = vmatprep.subr.bf16.mxu0 %v613_v1 }
  0x2d   :  { %551 = vmatpush3.bf16.msra.mxu1 %v581_v10 }
  0x2e   :  { %552 = vmatprep.subr.bf16.mxu1 %v613_v1 }
  0x2f   :  { %535 = vmatpush3.bf16.msra.mxu0 %v582_v11 }
  0x30   :  { %536 = vmatprep.subr.bf16.mxu0 %v613_v1 }
  0x31   :  { %553 = vmatpush3.bf16.msra.mxu1 %v583_v12 }
  0x32   :  { %554 = vmatprep.subr.bf16.mxu1 %v613_v1 }
  0x33   :  { %537 = vmatpush3.bf16.msra.mxu0 %v584_v13 }
  0x34   :  { %538 = vmatprep.subr.bf16.mxu0 %v613_v1 }
  0x35   :  { %555 = vmatpush3.bf16.msra.mxu1 %v585_v14 }
  0x36   :  { %556 = vmatprep.subr.bf16.mxu1 %v613_v1 }
  0x37   :  { %539 = vmatpush3.bf16.msra.mxu0 %v586_v15 }
  0x38   :  { %562 = vmatprep.subr.bf16.mxu0 %v613_v1 }
  0x39   :  { %557 = vmatpush3.bf16.msra.mxu1 %v587_v16 }
  0x3a   :  { %541 = vmatmul.mubr.msk.bf16.vlgmr.msra.gmra.mxu0 %vm100_vm2, %v590_v23 }
  0x3b   :  { %563 = vmatpush3.bf16.msra.mxu0 %v367_v24  ;;  %564 = vmatprep.mubr.msk.bf16.mxu0 %vm614_vm1, %v613_v1 }
  0x3c   :  { %559 = vmatmul.mubr.msk.bf16.vlgmr.msra.gmra.mxu1 %vm100_vm2, %v588_v17 }
  0xde   :  { %v142_v25 = vpop.f32.mrf.mxu0 }
  0xe0   :  { %v506_v26 = vpop.f32.mrf.mxu0  ;;  %v233_v27 = vpop.f32.mrf.mxu1 }
  0xe1   :  { %v234_v36 = vadd.f32 %v233_v27, %v142_v25 }
  0xe2   :  { %v145_v28 = vpop.f32.mrf.mxu0  ;;  %v524_v29 = vpop.f32.mrf.mxu1 }
  0xe3   :  { %v247_v45 = vadd.f32 %v448_v40, %v234_v36 }
  0xe4   :  { %v507_v30 = vpop.f32.mrf.mxu0  ;;  %v236_v31 = vpop.f32.mrf.mxu1 }
  0xe5   :  { %v237_v37 = vadd.f32 %v236_v31, %v145_v28  ;;  %v249_v51 = vmax.f32 %v247_v45, 0.0 }
  0xe6   :  { %v525_v32 = vpop.f32.mrf.mxu1 }
  0xe7   :  { %v248_v46 = vadd.f32 %v448_v40, %v237_v37 }
  0xe9   :  { %v250_v52 = vmax.f32 %v248_v46, 0.0 }
  0xfa   :  { %v296_v33 = vpop.f32.mrf.mxu0 }
  0xfc   :  { %v542_v34 = vpop.f32.mrf.mxu0  ;;  %v337_v35 = vpop.f32.mrf.mxu1 }
  0xfd   :  { %v338_v38 = vadd.f32 %v337_v35, %v296_v33 }
  0xfe   :  { %v299_v39 = vpop.f32.mrf.mxu0  ;;  %v560_v41 = vpop.f32.mrf.mxu1 }
  0xff   :  { %v344_v42 = vadd.f32 %v448_v40, %v338_v38 }
 0x100   :  { %v543_v43 = vpop.f32.mrf.mxu0  ;;  %v340_v44 = vpop.f32.mrf.mxu1 }
 0x101   :  { %v341_v47 = vadd.f32 %v340_v44, %v299_v39  ;;  %v346_v49 = vmax.f32 %v344_v42, 0.0 }
 0x102   :  { %v561_v48 = vpop.f32.mrf.mxu1 }
 0x103   :  { %v345_v50 = vadd.f32 %v448_v40, %v341_v47  ;;  %v348_v54 = vmax.f32 %v249_v51, %v346_v49 }
 0x105   :  { %v347_v53 = vmax.f32 %v345_v50, 0.0 }
 0x107   :  { %v349_v55 = vmax.f32 %v250_v52, %v347_v53 }
 0x109   :  { %v350_v56 = vpack.c.bf16 %v349_v55, %v348_v54 }
 0x10b   :  { %565 = vmatmul.mubr.msk.bf16.vlgmr.msra.gmra.mxu0 %vm359_vm4, %v350_v56 }
 0x1cb   :  { %v403_v58 = vpop.f32.mrf.mxu0 }
 0x1cc   :  { %v404_v59 = vadd.f32 %v454_v57, %v403_v58 }
 0x1cd   :  { %v566_v60 = vpop.f32.mrf.mxu0 }
 0x1ce   :  { %410 = vst [vmem:[#allocation2] sm:$0xff] %v404_v59 }
 0x1cf   :  { %v406_v61 = vpop.f32.mrf.mxu0 }
 0x1d0   :  { %v407_v62 = vadd.f32 %v454_v57, %v406_v61 }
 0x1d1   :  { %v567_v63 = vpop.f32.mrf.mxu0 }
 0x1d2   :  { %411 = vst [vmem:[#allocation2 + $0x8] sm:$0xff] %v407_v62 }
 0x1d3   :  { %602 = shalt.err (!%p599_p4)
}
 0x1d4   :  { %s617_s11 = smov 128   ;;  %s618_s5 = smov 8  }
 0x1d5   :  { %423 = dma.vmem_to_hbm [thread:$0]  %s418_s9, 256, %s769_s6, [#allocation3], %s617_s11, %s617_s11, %s618_s5  }
 0x1d6   :  { %611 = dma.done.wait [#allocation3], 256  }
 0x1d7   :  { %612 = vsyncadd [#allocation3], 4294967040 }
 0x1d8   :  { %427 = vsyncpa [#allocation3], 1 }

</bundles_post_ra>
